<compile_context>
chip_gen: v7x
topology: tpu7x:2x2x1
jax: 0.10.0
libtpu: 0.0.40
codegen_flags: <defaults>
</compile_context>

<pallas_src>
import math

import jax
import jax.numpy as jnp
from jax.experimental import pallas as pl
from jax.experimental.pallas import tpu as pltpu

K_DIM = 64
LATENT_DIM = 64
Q_GROUP = 4
V_DIM = 64
OUT_W = V_DIM * Q_GROUP  # 256: flattened, lane-dense output width


def _qgrouping_kernel(emb_ref, wkq_ref, wv_exp_ref, out_ref):
    emb = emb_ref[...]                                                # (bm, LATENT_DIM)
    bm = emb.shape[0]

    # Value stream, already in the flattened (V_DIM*Q_GROUP) lane layout:
    #   v_rep[b, v*Q_GROUP + g] = (emb @ W_V)[b, v]
    v_rep = jnp.dot(emb, wv_exp_ref[...],
                    preferred_element_type=jnp.float32)               # (bm, 256)

    # Attention logits with W_K @ Q folded into one [LATENT_DIM, Q_GROUP] weight.
    logits = jnp.dot(emb, wkq_ref[...],
                     preferred_element_type=jnp.float32)              # (bm, 4)

    # Softmax over the Q_GROUP axis (PyTorch dim=2 on [B,1,Q_GROUP]); exact division.
    m = jnp.max(logits, axis=-1, keepdims=True)
    e = jnp.exp(logits - m)
    att = e / jnp.sum(e, axis=-1, keepdims=True)                      # (bm, 4)

    # Expand att across lanes without touching the MXU:
    #   att_rep[b, j] = att[b, j % Q_GROUP]
    # (iota + compare + select = pure VPU work; no risky reshapes/gathers.)
    lane = jax.lax.broadcasted_iota(jnp.int32, (bm, OUT_W), 1) % Q_GROUP
    att_rep = jnp.where(lane == 0, att[:, 0:1],
              jnp.where(lane == 1, att[:, 1:2],
              jnp.where(lane == 2, att[:, 2:3], att[:, 3:4])))        # (bm, 256)

    # Lane-dense store: full unmasked vst on a 256-wide tile.
    out_ref[...] = (v_rep * att_rep).astype(out_ref.dtype)


def _pick_block_b(B):
    """Row-block size: multiple of 8, <= 2048, and >= 2 grid steps when B >= 16."""
    if B < 16:
        return B                      # single block; block dim == full array dim
    target = min(2048, pl.cdiv(B, 2))  # keep >= 2 steps (v7x megacore sharding)
    return ((target + 7) // 8) * 8


def qgrouping_forward(emb, w_k, w_v, q, *, block_b=None):
    B, L = emb.shape
    assert L == LATENT_DIM
    if block_b is None:
        block_b = _pick_block_b(B)

    dtype = emb.dtype
    itemsize = jnp.dtype(dtype).itemsize

    # Fold W_K @ Q (algebraically exact, done in f32): logits = emb @ (W_K @ Q).
    w_kq = jnp.dot(w_k.astype(jnp.float32), q.astype(jnp.float32),
                   preferred_element_type=jnp.float32).astype(dtype)  # (L, 4)
    # Repeat each W_V column Q_GROUP times so the value matmul emits the
    # flattened lane-dense layout directly: w_v_exp[:, v*Q_GROUP + g] = W_V[:, v].
    w_v_exp = jnp.repeat(w_v, Q_GROUP, axis=1).astype(dtype)          # (L, 256)

    grid = (pl.cdiv(B, block_b),)      # ragged last block is padded/masked by Pallas

    flops = 2 * B * LATENT_DIM * (OUT_W + Q_GROUP) + 4 * B * OUT_W
    bytes_accessed = itemsize * (B * LATENT_DIM + B * OUT_W
                                 + LATENT_DIM * OUT_W + LATENT_DIM * Q_GROUP)

    out_flat = pl.pallas_call(
        _qgrouping_kernel,
        out_shape=jax.ShapeDtypeStruct((B, OUT_W), dtype),
        grid_spec=pltpu.PrefetchScalarGridSpec(
            num_scalar_prefetch=0,
            grid=grid,
            in_specs=[
                pl.BlockSpec((block_b, LATENT_DIM), lambda i: (i, 0)),
                pl.BlockSpec((LATENT_DIM, Q_GROUP), lambda i: (0, 0)),
                pl.BlockSpec((LATENT_DIM, OUT_W), lambda i: (0, 0)),
            ],
            out_specs=pl.BlockSpec((block_b, OUT_W), lambda i: (i, 0)),
        ),
        compiler_params=pltpu.CompilerParams(
            dimension_semantics=("parallel",),
            vmem_limit_bytes=32 << 20),      # 2048-row blocks fit on v5e too
        cost_estimate=pl.CostEstimate(
            flops=flops,
            transcendentals=B * Q_GROUP,
            bytes_accessed=bytes_accessed),
    )(emb, w_kq, w_v_exp)

    # Free row-major metadata reshape back to the PyTorch output layout.
    return out_flat.reshape(B, V_DIM, Q_GROUP)


def _xavier_uniform(key, shape, gain):
    fan_in, fan_out = shape[0], shape[1]
    bound = gain * math.sqrt(6.0 / (fan_in + fan_out))
    return jax.random.uniform(key, shape, jnp.float32, minval=-bound, maxval=bound)


def _reference(emb, w_k, w_v, q):
    k = emb @ w_k                                    # (B, K_DIM)
    v = emb @ w_v                                    # (B, V_DIM)
    att = jax.nn.softmax(k @ q, axis=-1)             # (B, Q_GROUP)
    return v[:, :, None] * att[:, None, :]           # (B, V_DIM, Q_GROUP)


if __name__ == "__main__":
    key = jax.random.PRNGKey(0)
    k_emb, k_q, k_wk, k_wv = jax.random.split(key, 4)

    gain = math.sqrt(2.0)  # nn.init.calculate_gain('relu')
    Q = _xavier_uniform(k_q, (K_DIM, Q_GROUP), gain)
    W_K = _xavier_uniform(k_wk, (LATENT_DIM, K_DIM), gain)
    W_V = _xavier_uniform(k_wv, (LATENT_DIM, V_DIM), gain)

    # Small, aligned batch (single block).
    B = 8
    emb = jax.random.normal(k_emb, (B, LATENT_DIM), jnp.float32)
    out = jax.block_until_ready(qgrouping_forward(emb, W_K, W_V, Q))
    ref = _reference(emb, W_K, W_V, Q)
    assert out.shape == (B, V_DIM, Q_GROUP), out.shape
    assert jnp.allclose(out, ref, atol=5e-4, rtol=1e-3), float(
        jnp.max(jnp.abs(out - ref)))

    # Awkward batch: exercises the cdiv grid + ragged (masked) last block.
    B2 = 20
    emb2 = jax.random.normal(jax.random.PRNGKey(1), (B2, LATENT_DIM), jnp.float32)
    out2 = jax.block_until_ready(qgrouping_forward(emb2, W_K, W_V, Q))
    ref2 = _reference(emb2, W_K, W_V, Q)
    assert out2.shape == (B2, V_DIM, Q_GROUP), out2.shape
    assert jnp.allclose(out2, ref2, atol=5e-4, rtol=1e-3), float(
        jnp.max(jnp.abs(out2 - ref2)))

    print("KERNEL_OK")
</pallas_src>

<mosaic_0001>
module attributes {stable_mosaic.version = 11 : i64} {
  func.func @_qgrouping_kernel(%arg0: i32, %arg1: memref<8x64xf32, #tpu.memory_space<vmem>>, %arg2: memref<64x4xf32, #tpu.memory_space<vmem>>, %arg3: memref<64x256xf32, #tpu.memory_space<vmem>>, %arg4: memref<8x256xf32, #tpu.memory_space<vmem>>) attributes {dimension_semantics = [#tpu.dimension_semantics<parallel>], iteration_bounds = array<i64: 1>, scalar_prefetch = 0 : i64, scratch_operands = 0 : i64, tpu.core_type = #tpu.core_type<tc>, window_params = [{transform_indices = @transform_0, window_bounds = array<i64: 8, 64>}, {pipeline_mode = #tpu.pipeline_mode<synchronous>, transform_indices = @transform_1, window_bounds = array<i64: 64, 4>}, {pipeline_mode = #tpu.pipeline_mode<synchronous>, transform_indices = @transform_2, window_bounds = array<i64: 64, 256>}, {transform_indices = @transform_3, window_bounds = array<i64: 8, 256>}]} {
    %c0 = arith.constant 0 : index
    %c0_0 = arith.constant 0 : index
    %0 = vector.load %arg1[%c0, %c0_0] : memref<8x64xf32, #tpu.memory_space<vmem>>, vector<8x64xf32>
    %c0_1 = arith.constant 0 : index
    %c0_2 = arith.constant 0 : index
    %1 = vector.load %arg3[%c0_1, %c0_2] : memref<64x256xf32, #tpu.memory_space<vmem>>, vector<64x256xf32>
    %cst = arith.constant dense<0.000000e+00> : vector<8x256xf32>
    %2 = tpu.matmul %0, %1, %cst {dimension_numbers = #tpu.dot_dimension_numbers<[1], [0], [0], [1], [0, 0, 1, 1], [], []>} : vector<8x64xf32>, vector<64x256xf32>, vector<8x256xf32> -> vector<8x256xf32>
    %c0_3 = arith.constant 0 : index
    %c0_4 = arith.constant 0 : index
    %3 = vector.load %arg2[%c0_3, %c0_4] : memref<64x4xf32, #tpu.memory_space<vmem>>, vector<64x4xf32>
    %cst_5 = arith.constant dense<0.000000e+00> : vector<8x4xf32>
    %4 = tpu.matmul %0, %3, %cst_5 {dimension_numbers = #tpu.dot_dimension_numbers<[1], [0], [0], [1], [0, 0, 1, 1], [], []>} : vector<8x64xf32>, vector<64x4xf32>, vector<8x4xf32> -> vector<8x4xf32>
    %cst_6 = arith.constant dense<0xFF800000> : vector<8xf32>
    %5 = vector.multi_reduction <maximumf>, %4, %cst_6 [1] : vector<8x4xf32> to vector<8xf32>
    %6 = vector.shape_cast %5 : vector<8xf32> to vector<8x1xf32>
    %7 = vector.broadcast %6 : vector<8x1xf32> to vector<8x4xf32>
    %8 = arith.subf %4, %7 : vector<8x4xf32>
    %9 = math.exp %8 : vector<8x4xf32>
    %cst_7 = arith.constant dense<0.000000e+00> : vector<8xf32>
    %10 = vector.multi_reduction <add>, %9, %cst_7 [1] : vector<8x4xf32> to vector<8xf32>
    %11 = vector.shape_cast %10 : vector<8xf32> to vector<8x1xf32>
    %12 = vector.broadcast %11 : vector<8x1xf32> to vector<8x4xf32>
    %13 = arith.divf %9, %12 : vector<8x4xf32>
    %14 = tpu.iota {dimensions = array<i32: 1>} : vector<8x256xi32>
    %c4_i32 = arith.constant 4 : i32
    %c0_i32 = arith.constant 0 : i32
    %15 = arith.cmpi eq, %c4_i32, %c0_i32 : i32
    %c1_i32 = arith.constant 1 : i32
    %16 = arith.select %15, %c1_i32, %c4_i32 : i32
    %17 = vector.broadcast %16 : i32 to vector<8x256xi32>
    %18 = arith.remsi %14, %17 : vector<8x256xi32>
    %c0_i32_8 = arith.constant 0 : i32
    %19 = vector.broadcast %c0_i32_8 : i32 to vector<8x256xi32>
    %20 = arith.cmpi ne, %18, %19 : vector<8x256xi32>
    %c0_i32_9 = arith.constant 0 : i32
    %21 = vector.broadcast %c0_i32_9 : i32 to vector<8x256xi32>
    %22 = arith.cmpi slt, %18, %21 : vector<8x256xi32>
    %c0_i32_10 = arith.constant 0 : i32
    %23 = arith.cmpi slt, %16, %c0_i32_10 : i32
    %24 = vector.broadcast %23 : i1 to vector<8x256xi1>
    %25 = vector.broadcast %24 : vector<8x256xi1> to vector<8x256xi1>
    %26 = arith.xori %22, %25 : vector<8x256xi1>
    %27 = arith.andi %26, %20 : vector<8x256xi1>
    %28 = vector.broadcast %16 : i32 to vector<8x256xi32>
    %29 = arith.addi %18, %28 : vector<8x256xi32>
    %30 = arith.select %27, %29, %18 : vector<8x256xi1>, vector<8x256xi32>
    %c0_i32_11 = arith.constant 0 : i32
    %31 = vector.broadcast %c0_i32_11 : i32 to vector<8x256xi32>
    %32 = arith.cmpi eq, %30, %31 : vector<8x256xi32>
    %33 = vector.extract_strided_slice %13 {offsets = [0, 0], sizes = [8, 1], strides = [1, 1]} : vector<8x4xf32> to vector<8x1xf32>
    %c1_i32_12 = arith.constant 1 : i32
    %34 = vector.broadcast %c1_i32_12 : i32 to vector<8x256xi32>
    %35 = arith.cmpi eq, %30, %34 : vector<8x256xi32>
    %36 = vector.extract_strided_slice %13 {offsets = [0, 1], sizes = [8, 1], strides = [1, 1]} : vector<8x4xf32> to vector<8x1xf32>
    %c2_i32 = arith.constant 2 : i32
    %37 = vector.broadcast %c2_i32 : i32 to vector<8x256xi32>
    %38 = arith.cmpi eq, %30, %37 : vector<8x256xi32>
    %39 = vector.extract_strided_slice %13 {offsets = [0, 2], sizes = [8, 1], strides = [1, 1]} : vector<8x4xf32> to vector<8x1xf32>
    %40 = vector.extract_strided_slice %13 {offsets = [0, 3], sizes = [8, 1], strides = [1, 1]} : vector<8x4xf32> to vector<8x1xf32>
    %41 = vector.shape_cast %39 : vector<8x1xf32> to vector<8x1xf32>
    %42 = vector.broadcast %41 : vector<8x1xf32> to vector<8x256xf32>
    %43 = vector.shape_cast %40 : vector<8x1xf32> to vector<8x1xf32>
    %44 = vector.broadcast %43 : vector<8x1xf32> to vector<8x256xf32>
    %45 = arith.select %38, %42, %44 : vector<8x256xi1>, vector<8x256xf32>
    %46 = vector.shape_cast %36 : vector<8x1xf32> to vector<8x1xf32>
    %47 = vector.broadcast %46 : vector<8x1xf32> to vector<8x256xf32>
    %48 = arith.select %35, %47, %45 : vector<8x256xi1>, vector<8x256xf32>
    %49 = vector.shape_cast %33 : vector<8x1xf32> to vector<8x1xf32>
    %50 = vector.broadcast %49 : vector<8x1xf32> to vector<8x256xf32>
    %51 = arith.select %32, %50, %48 : vector<8x256xi1>, vector<8x256xf32>
    %52 = arith.mulf %2, %51 : vector<8x256xf32>
    %c0_13 = arith.constant 0 : index
    %c0_14 = arith.constant 0 : index
    %53 = vector.load %arg4[%c0_13, %c0_14] : memref<8x256xf32, #tpu.memory_space<vmem>>, vector<8x256xf32>
    tpu.vector_store %arg4[%c0_13, %c0_14], %52 {strides = array<i32>} : memref<8x256xf32, #tpu.memory_space<vmem>>, vector<8x256xf32>,
    return
  }
  func.func @transform_0(%arg0: i32) -> (i32, i32) {
    %c0_i32 = arith.constant 0 : i32
    %c0_i32_0 = arith.constant 0 : i32
    return %arg0, %c0_i32 : i32, i32
  }
  func.func @transform_1(%arg0: i32) -> (i32, i32) {
    %c0_i32 = arith.constant 0 : i32
    %c0_i32_0 = arith.constant 0 : i32
    %c0_i32_1 = arith.constant 0 : i32
    return %c0_i32, %c0_i32_0 : i32, i32
  }
  func.func @transform_2(%arg0: i32) -> (i32, i32) {
    %c0_i32 = arith.constant 0 : i32
    %c0_i32_0 = arith.constant 0 : i32
    %c0_i32_1 = arith.constant 0 : i32
    return %c0_i32, %c0_i32_0 : i32, i32
  }
  func.func @transform_3(%arg0: i32) -> (i32, i32) {
    %c0_i32 = arith.constant 0 : i32
    %c0_i32_0 = arith.constant 0 : i32
    return %arg0, %c0_i32 : i32, i32
  }
}

</mosaic_0001>

<bundles_post_ra>
// kernel: tpu_custom_call.1
= control target key start
LH: loop header
LB: loop body
LE: loop exit
PB: predicated region body
PF: predicated region fallthrough
CT: control target
= control target key end

     0   :  { %8 = vsyncpa [#allocation3], 0  ;;  %s498_s0 = inlined_call_operand.vmem [shape: f32[8,64], index: 0, kind: input, shape index: {}]   ;;  %s499_s1 = inlined_call_operand.vmem [shape: f32[64,4], index: 1, kind: input, shape index: {}]   ;;  %s500_s2 = inlined_call_operand.hbm [shape: f32[64,256], index: 2, kind: input, shape index: {}]   ;;  %s501_s3 = inlined_call_operand.hbm [shape: f32[8,256], index: 3, kind: output, shape index: {}]  }
   0x1   :  { %9 = vsyncpa [#allocation4], 0  ;;  %s412_s12 = smov [#allocation2]   ;;  %s364_s16 = scalar_lea.hbm %s500_s2, 2048 }
   0x2   :  { %s19_s13 = sshll.u32 %s412_s12, 4  ;;  %p365_p0 = scmp.ne.s32.totalorder %s500_s2, %s364_s16  ;;  %s20_s13 = int_to_ptr.vmem [resolvable:$true] %s19_s13 }
   0x3   :  { %p368_p1 = scmp.lt.u32.totalorder %s364_s16, %s500_s2 }
   0x5   :  { %p370_p2 = pnand %p368_p1, %p365_p0 }
   0x7   :  { %373 = shalt.err (!%p370_p2)
}
   0x8   :  { %s374_s21 = scalar_lea.vmem %s20_s13, 2048  ;;  %p379_p4 = scmp.lt.s32.totalorder %s20_s13, %s20_s13 }
   0x9   :  { %p375_p3 = scmp.ne.s32.totalorder %s20_s13, %s374_s21  ;;  %p380_p5 = scmp.lt.s32.totalorder %s374_s21, %s374_s21 }
   0xb   :  { %p381_p6 = por %p380_p5, %p379_p4 }
   0xd   :  { %p382_p7 = pnand %p381_p6, %p375_p3 }
   0xf   :  { %385 = shalt.err (!%p382_p7)
}
  0x10   :  { %s413_s22 = smov 256   ;;  %s414_s23 = smov 16  }
  0x11   :  { %25 = dma.hbm_to_vmem [thread:$0]  %s500_s2, 2048, %s20_s13, [#allocation3], %s413_s22, %s413_s22, %s414_s23  }
  0x12   :  { %408 = dma.done.wait [#allocation3], 2048  }
  0x13   :  { %409 = vsyncadd [#allocation3], 4294965248  ;;  %v415_v0 = vmov 0.0|0.0   ;;  %vm416_vm0 = vmmov 0   ;;  %v417_v1 = vmov 0.0   ;;  %v121_v2 = vld [vmem:[%s499_s1] sm:$0xff]  ;;  %v211_v56 = vlaneseq }
  0x14   :  { %332 = vmatprep.subr.bf16.mxu1 %v415_v0  ;;  %313 = vmatprep.mubr.msk.f32.mxu1 %vm416_vm0, %v417_v1  ;;  %v122_v3 = vld [vmem:[%s499_s1 + $0x8] sm:$0xff]  ;;  %v123_v4 = vld [vmem:[%s499_s1 + $0x10] sm:$0xff]  ;;  %v124_v6 = vld [vmem:[%s499_s1 + $0x18] sm:$0xff]  ;;  %vm46_vm1 = vcmask 523264   ;;  %vm199_vm2 = vcmask 31744   ;;  %v418_v47 = vmov 1  }
  0x15   :  { %114 = vmatprep.mubr.f32.mxu0 %v417_v1  ;;  %v333_v5 = vpack.c.bf16 %v122_v3, %v121_v2  ;;  %v336_v7 = vpack.c.bf16 %v124_v6, %v123_v4  ;;  %v125_v8 = vld [vmem:[%s499_s1 + $0x20] sm:$0xff]  ;;  %v126_v9 = vld [vmem:[%s499_s1 + $0x28] sm:$0xff]  ;;  %v127_v11 = vld [vmem:[%s499_s1 + $0x30] sm:$0xff]  ;;  %357 = vset.pattern.permute.xlu0 %v418_v47  ;;  %v419_v48 = vmov 2   ;;  %v420_v52 = vmov 3  }
  0x16   :  { %v339_v10 = vpack.c.bf16 %v126_v9, %v125_v8  ;;  %v128_v12 = vld [vmem:[%s499_s1 + $0x38] sm:$0xff]  ;;  %v29_v14 = vld [vmem:[%s498_s0] sm:$0xff]  ;;  %v31_v18 = vld [vmem:[#allocation2 + $0x8] sm:$0xff]  ;;  %355 = vset.pattern.permute.xlu1 %v419_v48  ;;  %v421_v53 = vmov 0   ;;  %v212_v57 = vand.u32 127, %v211_v56  ;;  %s422_s0 = smov [#allocation5]  }
  0x17   :  { %334 = vmatpush3.bf16.msra.mxu1 %v333_v5  ;;  %v342_v13 = vpack.c.bf16 %v128_v12, %v127_v11  ;;  %v33_v19 = vld [vmem:[#allocation2 + $0x18] sm:$0xff]  ;;  %v30_v20 = vld [vmem:[#allocation2] sm:$0xff]  ;;  %v32_v22 = vld [vmem:[#allocation2 + $0x10] sm:$0xff]  ;;  %s277_s1 = sshll.u32 %s422_s0, 4  ;;  %s278_s1 = int_to_ptr.vmem [resolvable:$true] %s277_s1 }
  0x18   :  { %335 = vmatprep.subr.bf16.mxu1 %v415_v0  ;;  %v316_v21 = vpack.c.bf16 %v33_v19, %v31_v18  ;;  %v35_v23 = vld [vmem:[#allocation2 + $0x28] sm:$0xff]  ;;  %v37_v24 = vld [vmem:[#allocation2 + $0x38] sm:$0xff]  ;;  %v318_v25 = vpack.c.bf16 %v32_v22, %v30_v20  ;;  %v34_v27 = vld [vmem:[#allocation2 + $0x20] sm:$0xff]  ;;  %v213_v58 = vadd.s32 128, %v212_v57  ;;  %v218_v60 = vand.u32 3, %v212_v57  ;;  %s386_s16 = scalar_lea.vmem %s278_s1, 256  ;;  %p391_p9 = scmp.lt.s32.totalorder %s278_s1, %s278_s1 }
  0x19   :  { %v320_v26 = vpack.c.bf16 %v37_v24, %v35_v23  ;;  %v36_v28 = vld [vmem:[#allocation2 + $0x30] sm:$0xff]  ;;  %v39_v29 = vld [vmem:[#allocation2 + $0x48] sm:$0xff]  ;;  %v41_v30 = vld [vmem:[#allocation2 + $0x58] sm:$0xff]  ;;  %p387_p8 = scmp.ne.s32.totalorder %s278_s1, %s386_s16  ;;  %p392_p10 = scmp.lt.s32.totalorder %s386_s16, %s386_s16 }
  0x1a   :  { %317 = vmatprep.subr.bf16.mxu0 %v316_v21  ;;  %v322_v31 = vpack.c.bf16 %v36_v28, %v34_v27  ;;  %v324_v32 = vpack.c.bf16 %v41_v30, %v39_v29  ;;  %v38_v33 = vld [vmem:[#allocation2 + $0x40] sm:$0xff]  ;;  %v40_v34 = vld [vmem:[#allocation2 + $0x50] sm:$0xff]  ;;  %v43_v35 = vld [vmem:[#allocation2 + $0x68] sm:$0xff]  ;;  %v225_v61 = vand.u32 3, %v213_v58  ;;  %vm242_vm3 = vcmp.eq.s32.totalorder %v218_v60, 2 }
  0x1b   :  { %337 = vmatpush3.bf16.msra.mxu1 %v336_v7  ;;  %319 = vmatpush1.bf16.msra.mxu0 %v318_v25  ;;  %v45_v36 = vld [vmem:[#allocation2 + $0x78] sm:$0xff]  ;;  %v326_v37 = vpack.c.bf16 %v40_v34, %v38_v33  ;;  %v42_v39 = vld [vmem:[#allocation2 + $0x60] sm:$0xff]  ;;  %v44_v40 = vld [vmem:[#allocation2 + $0x70] sm:$0xff]  ;;  %vm240_vm5 = vcmp.eq.s32.totalorder %v218_v60, 1  ;;  %vm238_vm7 = vcmp.eq.s32.totalorder %v218_v60, 0  ;;  %p393_p11 = por %p392_p10, %p391_p9 }
  0x1c   :  { %338 = vmatprep.subr.bf16.mxu1 %v415_v0  ;;  %321 = vmatprep.subr.bf16.mxu0 %v320_v26  ;;  %v328_v38 = vpack.c.bf16 %v45_v36, %v43_v35  ;;  %v330_v41 = vpack.c.bf16 %v44_v40, %v42_v39  ;;  %vm243_vm4 = vcmp.eq.s32.totalorder %v225_v61, 2  ;;  %vm241_vm6 = vcmp.eq.s32.totalorder %v225_v61, 1 }
  0x1d   :  { %vm239_vm8 = vcmp.eq.s32.totalorder %v225_v61, 0  ;;  %p394_p12 = pnand %p393_p11, %p387_p8 }
  0x1f   :  { %340 = vmatpush3.bf16.msra.mxu1 %v339_v10  ;;  %323 = vmatpush1.bf16.msra.mxu0 %v322_v31 }
  0x20   :  { %341 = vmatprep.subr.bf16.mxu1 %v415_v0  ;;  %325 = vmatprep.subr.bf16.mxu0 %v324_v32 }
  0x23   :  { %343 = vmatpush3.bf16.msra.mxu1 %v342_v13  ;;  %327 = vmatpush1.bf16.msra.mxu0 %v326_v37 }
  0x24   :  { %329 = vmatprep.subr.bf16.mxu0 %v328_v38 }
  0x26   :  { %314 = vmatmul.mubr.msk.f32.vlgmr.msra.gmra.mrb[0].mxu1 %vm46_vm1, %v29_v14 }
  0x27   :  { %331 = vmatpush1.bf16.msra.mxu0 %v330_v41 }
  0x2a   :  { %286 = vmatmul.mubr.msk.f32.vlgmr.msra.gmra.mrb[0].mxu0 %vm46_vm1, %v29_v14 }
  0xf9   :  { %v195_v15 = vpop.f32.mrb[0].mxu1 }
  0xfa   :  { %v315_v16 = vpop.f32.mrb[1].mxu1  ;;  %v200_v17 = vsel %vm199_vm2, %v195_v15, -inf }
  0xfb   :  { %201 = vmax.xlane.f32.xlu0 %v200_v17 }
  0xfd   :  { %v116_v54 = vpop.f32.mrb[0].mxu0 }
  0xfe   :  { %v118_v55 = vpop.f32.mrb[1].mxu0 }
 0x188   :  { %v202_v42 = vpop.xlane.xlu0 %201 }
 0x189   :  { %v203_v43 = vsub.f32 %v195_v15, %v202_v42 }
 0x18b   :  { %v204_v44 = vmul.f32 1.442695, %v203_v43 }
 0x18d   :  { %360 = vpow2.f32 %v204_v44 }
 0x197   :  { %v361_v45 = vpop.eup %360 }
 0x198   :  { %v206_v46 = vsel %vm199_vm2, %v361_v45, 0.0 }
 0x199   :  { %207 = vadd.xlane.f32.xlu0 %v206_v46 }
 0x226   :  { %v208_v49 = vpop.xlane.xlu0 %207 }
 0x227   :  { %362 = vrcp.f32 %v208_v49 }
 0x231   :  { %v363_v50 = vpop.eup %362 }
 0x232   :  { %v210_v51 = vmul.f32 %v363_v50, %v361_v45 }
 0x234   :  { %256 = vperm.xlu0 %357, %v210_v51   ;;  %246 = vperm.xlu1 %355, %v210_v51  }
 0x238   :  { %356 = vset.pattern.permute.xlu1 %v420_v52  ;;  %359 = vset.pattern.permute.xlu0 %v421_v53 }
 0x239   :  { %250 = vperm.xlu1 %356, %v210_v51  }
 0x23d   :  { %358 = vset.pattern.permute.xlu1 %v421_v53 }
 0x23e   :  { %262 = vperm.xlu1 %358, %v210_v51  }
 0x2b3   :  { %v247_v59 = vpop.permute.xlu1 %246  ;;  %v257_v1 = vpop.permute.xlu0 %256 }
 0x2b8   :  { %v251_v62 = vpop.permute.xlu1 %250 }
 0x2b9   :  { %v253_v63 = vsel %vm242_vm3, %v247_v59, %v251_v62  ;;  %v254_v0 = vsel %vm243_vm4, %v247_v59, %v251_v62 }
 0x2ba   :  { %v259_v2 = vsel %vm240_vm5, %v257_v1, %v253_v63  ;;  %v260_v4 = vsel %vm241_vm6, %v257_v1, %v254_v0 }
 0x2bd   :  { %v263_v3 = vpop.permute.xlu1 %262 }
 0x2be   :  { %v265_v5 = vsel %vm238_vm7, %v263_v3, %v259_v2  ;;  %v266_v6 = vsel %vm239_vm8, %v263_v3, %v260_v4 }
 0x2bf   :  { %v267_v7 = vmul.f32 %v265_v5, %v116_v54  ;;  %v268_v8 = vmul.f32 %v266_v6, %v118_v55 }
 0x2c1   :  { %269 = vst [vmem:[#allocation5] sm:$0xff] %v267_v7  ;;  %270 = vst [vmem:[#allocation5 + $0x8] sm:$0xff] %v268_v8 }
 0x2c2   :  { %397 = shalt.err (!%p394_p12)
}
 0x2c3   :  { %s398_s19 = scalar_lea.hbm %s501_s3, 256 }
 0x2c4   :  { %p399_p13 = scmp.ne.s32.totalorder %s501_s3, %s398_s19  ;;  %p402_p0 = scmp.lt.u32.totalorder %s398_s19, %s501_s3 }
 0x2c6   :  { %p404_p1 = pnand %p402_p0, %p399_p13 }
 0x2c8   :  { %407 = shalt.err (!%p404_p1)
}
 0x2c9   :  { %280 = dma.vmem_to_hbm [thread:$0]  %s278_s1, 256, %s501_s3, [#allocation4]  }
 0x2ca   :  { %410 = dma.done.wait [#allocation4], 256  }
 0x2cb   :  { %411 = vsyncadd [#allocation4], 4294967040 }
 0x2cc   :  { %284 = vsyncpa [#allocation3], 1 }
 0x2cd   :  { %285 = vsyncpa [#allocation4], 1 }

</bundles_post_ra>
